<compile_context>
chip_gen: v5e
topology: v5e:2x2
jax: 0.10.0
libtpu: 0.0.40
codegen_flags: <defaults>
</compile_context>

<pallas_src>
import functools

import numpy as np
import jax
import jax.numpy as jnp
from jax import lax
from jax.experimental import pallas as pl
from jax.experimental.pallas import tpu as pltpu

EPS = 1e-5

# (dh, dw) tap offsets, row-major over the 3x3 window.  Must match the weight
# repacking order in `basic_block` (k = (kh*3 + kw)*Cin + ci).
_OFFSETS = tuple((kh - 1, kw - 1) for kh in range(3) for kw in range(3))

# MXU input dtype: bf16 is native on v5e/v6e/v7x (f32 matmul is multi-pass).
# Accumulation stays f32 via preferred_element_type.
_MATMUL_DTYPE = jnp.bfloat16

# Up to this Cin, use im2col (K = 9*Cin feeds the MXU).  Above it, accumulate
# nine (Cout, Cin) x (Cin, L) matmuls to avoid the (9C, L) patch tensor.
_IM2COL_MAX_CIN = 16


def _basic_block_kernel(x_ref, w1_ref, w2_ref, g1_ref, b1_ref, g2_ref, b2_ref,
                        mask_ref, out_ref, *, n_batch, c, h, w):
    """Fused conv3x3 -> BN -> ReLU -> conv3x3 -> BN -> +x -> ReLU.

    x_ref    : (C, N*H*W) f32 input slab (batch folded onto the lane axis);
               also the residual source.
    w1_ref   : (C, 9*C)   bf16 conv1 weight packed as [co, (kh, kw, ci)]
    w2_ref   : (C, 9*C)   bf16 conv2 weight, same packing
    g*/b*    : (C, 1)     f32 BN gamma / beta (broadcast over lanes)
    mask_ref : (9, N*H*W) f32 {0,1} per-tap validity mask (handles conv
               zero-padding AND kills cross-image bleed from folding batch
               onto the lane axis)
    out_ref  : (C, N*H*W) f32 output slab
    """
    total_lanes = n_batch * h * w
    inv_count = 1.0 / float(total_lanes)
    masks = mask_ref[...]                                      # (9, L) f32

    def conv3x3(inp, w_ref):
        """(C, L) f32 activations -> (Cout, L) f32 conv output."""
        taps = []
        for t, (dh, dw) in enumerate(_OFFSETS):
            if (dh, dw) == (0, 0):
                taps.append(inp)                               # center: mask == 1
            else:
                lane_shift = dh * w + dw
                rolled = pltpu.roll(inp, shift=(-lane_shift) % total_lanes, axis=1)
                taps.append(rolled * masks[t:t + 1, :])        # zero invalid taps
        wmat = w_ref[...]                                      # (Cout, 9C) bf16
        if c <= _IM2COL_MAX_CIN:
            # im2col: one (Cout, 9C) x (9C, L) MXU matmul, f32 accumulation.
            patches = jnp.concatenate(taps, axis=0)            # (9C, L) f32
            return jnp.dot(wmat, patches.astype(_MATMUL_DTYPE),
                           preferred_element_type=jnp.float32)
        # Large-C path: accumulate 9 matmuls, never materialize (9C, L).
        acc = None
        for t in range(9):
            part = jnp.dot(wmat[:, t * c:(t + 1) * c],
                           taps[t].astype(_MATMUL_DTYPE),
                           preferred_element_type=jnp.float32)
            acc = part if acc is None else acc + part
        return acc

    def batchnorm(a, g_ref, b_ref):
        """Training-mode batch stats (biased var), single fused pass in f32."""
        s = jnp.sum(a, axis=1, keepdims=True)                  # (C, 1)
        ss = jnp.sum(a * a, axis=1, keepdims=True)             # (C, 1)
        mean = s * inv_count
        var = ss * inv_count - mean * mean                     # biased variance
        scale = g_ref[...] * lax.rsqrt(var + EPS)              # (C, 1)
        shift = b_ref[...] - mean * scale
        return a * scale + shift

    x_all = x_ref[...]                                         # (C, L) f32

    a1 = conv3x3(x_all, w1_ref)                                # conv1
    y1 = jnp.maximum(batchnorm(a1, g1_ref, b1_ref), 0.0)       # bn1 + relu
    a2 = conv3x3(y1, w2_ref)                                   # conv2
    y2 = batchnorm(a2, g2_ref, b2_ref)                         # bn2

    out_ref[...] = jnp.maximum(y2 + x_all, 0.0)                # residual + relu


def basic_block(x_nchw, w1_oihw, w2_oihw, g1, b1, g2, b2):
    """BasicBlock forward (stride=1, downsample=None).  NCHW in / NCHW out."""
    n, c, h, w = x_nchw.shape
    hw = h * w
    lanes = n * hw
    cout = w1_oihw.shape[0]
    assert cout == c == w1_oihw.shape[1], "downsample=None requires inplanes == planes"

    # One-time weight repack: OIHW -> (Cout, 9*Cin), k = (kh*3 + kw)*Cin + ci.
    w1m = jnp.transpose(w1_oihw, (0, 2, 3, 1)).reshape(cout, 9 * c).astype(_MATMUL_DTYPE)
    w2m = jnp.transpose(w2_oihw, (0, 2, 3, 1)).reshape(cout, 9 * c).astype(_MATMUL_DTYPE)

    # Per-tap validity masks over the flattened H*W axis, tiled across the
    # batch images that are folded onto the lane axis (trace-time constants).
    hh, ww = np.meshgrid(np.arange(h), np.arange(w), indexing="ij")
    mask_img = np.stack(
        [((hh + dh >= 0) & (hh + dh < h) & (ww + dw >= 0) & (ww + dw < w)).reshape(hw)
         for (dh, dw) in _OFFSETS]).astype(np.float32)         # (9, HW)
    masks = np.tile(mask_img, (1, n))                          # (9, N*HW)

    # Fold batch onto lanes: NCHW -> (C, N*H*W).  Lane dim = N*H*W (multiple
    # of 128) so all in-kernel stores are unmasked full-lane stores.
    x_slab = jnp.transpose(x_nchw, (1, 0, 2, 3)).reshape(c, lanes).astype(jnp.float32)

    kernel = functools.partial(_basic_block_kernel, n_batch=n, c=c, h=h, w=w)
    # Grid-less single invocation: the whole working set is a few KiB of VMEM.
    # TODO(synk): at real ResNet shapes, grid over batch / H-stripes with halo
    # rows, two-phase BN statistics, "parallel" dimension_semantics (v7x
    # megacore) and per-generation vmem_limit_bytes budgets.
    out_slab = pl.pallas_call(
        kernel,
        out_shape=jax.ShapeDtypeStruct((c, lanes), jnp.float32),
        in_specs=[pl.BlockSpec(memory_space=pltpu.MemorySpace.VMEM)] * 8,
        out_specs=pl.BlockSpec(memory_space=pltpu.MemorySpace.VMEM),
    )(x_slab, w1m, w2m,
      g1.reshape(c, 1).astype(jnp.float32), b1.reshape(c, 1).astype(jnp.float32),
      g2.reshape(c, 1).astype(jnp.float32), b2.reshape(c, 1).astype(jnp.float32),
      jnp.asarray(masks))

    return jnp.transpose(out_slab.reshape(c, n, h, w), (1, 0, 2, 3))


def _reference(x, w1_oihw, w2_oihw, g1, b1, g2, b2):
    """Pure-JAX f32 reference of the same forward pass (sanity check)."""
    x = x.astype(jnp.float32)

    def conv(inp, wt):
        return lax.conv_general_dilated(
            inp, wt, window_strides=(1, 1), padding="SAME",
            dimension_numbers=("NCHW", "OIHW", "NCHW"))

    def bn(inp, g, b):
        m = jnp.mean(inp, axis=(0, 2, 3), keepdims=True)
        v = jnp.mean((inp - m) ** 2, axis=(0, 2, 3), keepdims=True)
        return ((inp - m) * (g.reshape(1, -1, 1, 1) * lax.rsqrt(v + EPS))
                + b.reshape(1, -1, 1, 1))

    y = jnp.maximum(bn(conv(x, w1_oihw), g1, b1), 0.0)
    y = bn(conv(y, w2_oihw), g2, b2)
    return jnp.maximum(y + x, 0.0)


if __name__ == "__main__":
    # Small shapes consistent with the module: inplanes = planes = 4, stride = 1.
    N, C, H, W = 2, 4, 16, 16

    key = jax.random.PRNGKey(0)
    kx, kw1, kw2, kg1, kb1, kg2, kb2 = jax.random.split(key, 7)

    x = jax.random.normal(kx, (N, C, H, W), dtype=jnp.float32)

    fan_in = C * 3 * 3
    w1 = jax.random.normal(kw1, (C, C, 3, 3), dtype=jnp.float32) / np.sqrt(fan_in)
    w2 = jax.random.normal(kw2, (C, C, 3, 3), dtype=jnp.float32) / np.sqrt(fan_in)
    # nn.BatchNorm2d defaults are gamma=1 / beta=0; perturb to exercise affine.
    g1 = 1.0 + 0.1 * jax.random.normal(kg1, (C,), dtype=jnp.float32)
    b1 = 0.1 * jax.random.normal(kb1, (C,), dtype=jnp.float32)
    g2 = 1.0 + 0.1 * jax.random.normal(kg2, (C,), dtype=jnp.float32)
    b2 = 0.1 * jax.random.normal(kb2, (C,), dtype=jnp.float32)

    out = jax.block_until_ready(basic_block(x, w1, w2, g1, b1, g2, b2))
    ref = jax.block_until_ready(_reference(x, w1, w2, g1, b1, g2, b2))

    assert out.shape == (N, C, H, W)
    # Kernel uses bf16 MXU inputs (f32 accumulate) vs. the pure-f32 reference:
    # tolerance is loosened accordingly (per the perf review).
    np.testing.assert_allclose(np.asarray(out), np.asarray(ref), atol=5e-2, rtol=5e-2)

    print("KERNEL_OK")
</pallas_src>

<mosaic_0001>
module attributes {stable_mosaic.version = 11 : i64} {
  func.func @_basic_block_kernel(%arg0: memref<4x512xf32, #tpu.memory_space<vmem>>, %arg1: memref<4x36xbf16, #tpu.memory_space<vmem>>, %arg2: memref<4x36xbf16, #tpu.memory_space<vmem>>, %arg3: memref<4x1xf32, #tpu.memory_space<vmem>>, %arg4: memref<4x1xf32, #tpu.memory_space<vmem>>, %arg5: memref<4x1xf32, #tpu.memory_space<vmem>>, %arg6: memref<4x1xf32, #tpu.memory_space<vmem>>, %arg7: memref<9x512xf32, #tpu.memory_space<vmem>>, %arg8: memref<4x512xf32, #tpu.memory_space<vmem>>) attributes {dimension_semantics = [], scalar_prefetch = 0 : i64, scratch_operands = 0 : i64, tpu.core_type = #tpu.core_type<tc>} {
    %c0 = arith.constant 0 : index
    %c0_0 = arith.constant 0 : index
    %0 = vector.load %arg7[%c0, %c0_0] : memref<9x512xf32, #tpu.memory_space<vmem>>, vector<9x512xf32>
    %c0_1 = arith.constant 0 : index
    %c0_2 = arith.constant 0 : index
    %1 = vector.load %arg0[%c0_1, %c0_2] : memref<4x512xf32, #tpu.memory_space<vmem>>, vector<4x512xf32>
    %c17_i32 = arith.constant 17 : i32
    %2 = tpu.dynamic_rotate %1 by %c17_i32 dim 1 : vector<4x512xf32>, i32 -> vector<4x512xf32>
    %3 = vector.extract_strided_slice %0 {offsets = [0, 0], sizes = [1, 512], strides = [1, 1]} : vector<9x512xf32> to vector<1x512xf32>
    %4 = vector.broadcast %3 : vector<1x512xf32> to vector<4x512xf32>
    %5 = arith.mulf %2, %4 : vector<4x512xf32>
    %c16_i32 = arith.constant 16 : i32
    %6 = tpu.dynamic_rotate %1 by %c16_i32 dim 1 : vector<4x512xf32>, i32 -> vector<4x512xf32>
    %7 = vector.extract_strided_slice %0 {offsets = [1, 0], sizes = [1, 512], strides = [1, 1]} : vector<9x512xf32> to vector<1x512xf32>
    %8 = vector.broadcast %7 : vector<1x512xf32> to vector<4x512xf32>
    %9 = arith.mulf %6, %8 : vector<4x512xf32>
    %c15_i32 = arith.constant 15 : i32
    %10 = tpu.dynamic_rotate %1 by %c15_i32 dim 1 : vector<4x512xf32>, i32 -> vector<4x512xf32>
    %11 = vector.extract_strided_slice %0 {offsets = [2, 0], sizes = [1, 512], strides = [1, 1]} : vector<9x512xf32> to vector<1x512xf32>
    %12 = vector.broadcast %11 : vector<1x512xf32> to vector<4x512xf32>
    %13 = arith.mulf %10, %12 : vector<4x512xf32>
    %c1_i32 = arith.constant 1 : i32
    %14 = tpu.dynamic_rotate %1 by %c1_i32 dim 1 : vector<4x512xf32>, i32 -> vector<4x512xf32>
    %15 = vector.extract_strided_slice %0 {offsets = [3, 0], sizes = [1, 512], strides = [1, 1]} : vector<9x512xf32> to vector<1x512xf32>
    %16 = vector.broadcast %15 : vector<1x512xf32> to vector<4x512xf32>
    %17 = arith.mulf %14, %16 : vector<4x512xf32>
    %c511_i32 = arith.constant 511 : i32
    %18 = tpu.dynamic_rotate %1 by %c511_i32 dim 1 : vector<4x512xf32>, i32 -> vector<4x512xf32>
    %19 = vector.extract_strided_slice %0 {offsets = [5, 0], sizes = [1, 512], strides = [1, 1]} : vector<9x512xf32> to vector<1x512xf32>
    %20 = vector.broadcast %19 : vector<1x512xf32> to vector<4x512xf32>
    %21 = arith.mulf %18, %20 : vector<4x512xf32>
    %c497_i32 = arith.constant 497 : i32
    %22 = tpu.dynamic_rotate %1 by %c497_i32 dim 1 : vector<4x512xf32>, i32 -> vector<4x512xf32>
    %23 = vector.extract_strided_slice %0 {offsets = [6, 0], sizes = [1, 512], strides = [1, 1]} : vector<9x512xf32> to vector<1x512xf32>
    %24 = vector.broadcast %23 : vector<1x512xf32> to vector<4x512xf32>
    %25 = arith.mulf %22, %24 : vector<4x512xf32>
    %c496_i32 = arith.constant 496 : i32
    %26 = tpu.dynamic_rotate %1 by %c496_i32 dim 1 : vector<4x512xf32>, i32 -> vector<4x512xf32>
    %27 = vector.extract_strided_slice %0 {offsets = [7, 0], sizes = [1, 512], strides = [1, 1]} : vector<9x512xf32> to vector<1x512xf32>
    %28 = vector.broadcast %27 : vector<1x512xf32> to vector<4x512xf32>
    %29 = arith.mulf %26, %28 : vector<4x512xf32>
    %c495_i32 = arith.constant 495 : i32
    %30 = tpu.dynamic_rotate %1 by %c495_i32 dim 1 : vector<4x512xf32>, i32 -> vector<4x512xf32>
    %31 = vector.extract_strided_slice %0 {offsets = [8, 0], sizes = [1, 512], strides = [1, 1]} : vector<9x512xf32> to vector<1x512xf32>
    %32 = vector.broadcast %31 : vector<1x512xf32> to vector<4x512xf32>
    %33 = arith.mulf %30, %32 : vector<4x512xf32>
    %c0_3 = arith.constant 0 : index
    %c0_4 = arith.constant 0 : index
    %34 = vector.load %arg1[%c0_3, %c0_4] : memref<4x36xbf16, #tpu.memory_space<vmem>>, vector<4x36xbf16>
    %35 = tpu.concatenate %5, %9, %13, %17, %1, %21, %25, %29, %33 in 0 : vector<4x512xf32>, vector<4x512xf32>, vector<4x512xf32>, vector<4x512xf32>, vector<4x512xf32>, vector<4x512xf32>, vector<4x512xf32>, vector<4x512xf32>, vector<4x512xf32> -> vector<36x512xf32>
    %36 = arith.truncf %35 : vector<36x512xf32> to vector<36x512xbf16>
    %cst = arith.constant dense<0.000000e+00> : vector<4x512xf32>
    %37 = tpu.matmul %34, %36, %cst {dimension_numbers = #tpu.dot_dimension_numbers<[1], [0], [0], [1], [0, 0, 1, 1], [], []>} : vector<4x36xbf16>, vector<36x512xbf16>, vector<4x512xf32> -> vector<4x512xf32>
    %cst_5 = arith.constant dense<0.000000e+00> : vector<4xf32>
    %38 = vector.multi_reduction <add>, %37, %cst_5 [1] : vector<4x512xf32> to vector<4xf32>
    %39 = vector.shape_cast %38 : vector<4xf32> to vector<4x1xf32>
    %40 = arith.mulf %37, %37 : vector<4x512xf32>
    %cst_6 = arith.constant dense<0.000000e+00> : vector<4xf32>
    %41 = vector.multi_reduction <add>, %40, %cst_6 [1] : vector<4x512xf32> to vector<4xf32>
    %42 = vector.shape_cast %41 : vector<4xf32> to vector<4x1xf32>
    %cst_7 = arith.constant 0.001953125 : f32
    %43 = vector.broadcast %cst_7 : f32 to vector<4x1xf32>
    %44 = arith.mulf %39, %43 : vector<4x1xf32>
    %cst_8 = arith.constant 0.001953125 : f32
    %45 = vector.broadcast %cst_8 : f32 to vector<4x1xf32>
    %46 = arith.mulf %42, %45 : vector<4x1xf32>
    %47 = arith.mulf %44, %44 : vector<4x1xf32>
    %48 = arith.subf %46, %47 : vector<4x1xf32>
    %c0_9 = arith.constant 0 : index
    %c0_10 = arith.constant 0 : index
    %49 = vector.load %arg3[%c0_9, %c0_10] : memref<4x1xf32, #tpu.memory_space<vmem>>, vector<4x1xf32>
    %cst_11 = arith.constant 9.99999974E-6 : f32
    %50 = vector.broadcast %cst_11 : f32 to vector<4x1xf32>
    %51 = arith.addf %48, %50 : vector<4x1xf32>
    %52 = math.rsqrt %51 : vector<4x1xf32>
    %53 = arith.mulf %49, %52 : vector<4x1xf32>
    %c0_12 = arith.constant 0 : index
    %c0_13 = arith.constant 0 : index
    %54 = vector.load %arg4[%c0_12, %c0_13] : memref<4x1xf32, #tpu.memory_space<vmem>>, vector<4x1xf32>
    %55 = arith.mulf %44, %53 : vector<4x1xf32>
    %56 = arith.subf %54, %55 : vector<4x1xf32>
    %57 = vector.broadcast %53 : vector<4x1xf32> to vector<4x512xf32>
    %58 = arith.mulf %37, %57 : vector<4x512xf32>
    %59 = vector.broadcast %56 : vector<4x1xf32> to vector<4x512xf32>
    %60 = arith.addf %58, %59 : vector<4x512xf32>
    %cst_14 = arith.constant 0.000000e+00 : f32
    %61 = vector.broadcast %cst_14 : f32 to vector<4x512xf32>
    %62 = arith.maximumf %60, %61 : vector<4x512xf32>
    %c17_i32_15 = arith.constant 17 : i32
    %63 = tpu.dynamic_rotate %62 by %c17_i32_15 dim 1 : vector<4x512xf32>, i32 -> vector<4x512xf32>
    %64 = vector.extract_strided_slice %0 {offsets = [0, 0], sizes = [1, 512], strides = [1, 1]} : vector<9x512xf32> to vector<1x512xf32>
    %65 = vector.broadcast %64 : vector<1x512xf32> to vector<4x512xf32>
    %66 = arith.mulf %63, %65 : vector<4x512xf32>
    %c16_i32_16 = arith.constant 16 : i32
    %67 = tpu.dynamic_rotate %62 by %c16_i32_16 dim 1 : vector<4x512xf32>, i32 -> vector<4x512xf32>
    %68 = vector.extract_strided_slice %0 {offsets = [1, 0], sizes = [1, 512], strides = [1, 1]} : vector<9x512xf32> to vector<1x512xf32>
    %69 = vector.broadcast %68 : vector<1x512xf32> to vector<4x512xf32>
    %70 = arith.mulf %67, %69 : vector<4x512xf32>
    %c15_i32_17 = arith.constant 15 : i32
    %71 = tpu.dynamic_rotate %62 by %c15_i32_17 dim 1 : vector<4x512xf32>, i32 -> vector<4x512xf32>
    %72 = vector.extract_strided_slice %0 {offsets = [2, 0], sizes = [1, 512], strides = [1, 1]} : vector<9x512xf32> to vector<1x512xf32>
    %73 = vector.broadcast %72 : vector<1x512xf32> to vector<4x512xf32>
    %74 = arith.mulf %71, %73 : vector<4x512xf32>
    %c1_i32_18 = arith.constant 1 : i32
    %75 = tpu.dynamic_rotate %62 by %c1_i32_18 dim 1 : vector<4x512xf32>, i32 -> vector<4x512xf32>
    %76 = vector.extract_strided_slice %0 {offsets = [3, 0], sizes = [1, 512], strides = [1, 1]} : vector<9x512xf32> to vector<1x512xf32>
    %77 = vector.broadcast %76 : vector<1x512xf32> to vector<4x512xf32>
    %78 = arith.mulf %75, %77 : vector<4x512xf32>
    %c511_i32_19 = arith.constant 511 : i32
    %79 = tpu.dynamic_rotate %62 by %c511_i32_19 dim 1 : vector<4x512xf32>, i32 -> vector<4x512xf32>
    %80 = vector.extract_strided_slice %0 {offsets = [5, 0], sizes = [1, 512], strides = [1, 1]} : vector<9x512xf32> to vector<1x512xf32>
    %81 = vector.broadcast %80 : vector<1x512xf32> to vector<4x512xf32>
    %82 = arith.mulf %79, %81 : vector<4x512xf32>
    %c497_i32_20 = arith.constant 497 : i32
    %83 = tpu.dynamic_rotate %62 by %c497_i32_20 dim 1 : vector<4x512xf32>, i32 -> vector<4x512xf32>
    %84 = vector.extract_strided_slice %0 {offsets = [6, 0], sizes = [1, 512], strides = [1, 1]} : vector<9x512xf32> to vector<1x512xf32>
    %85 = vector.broadcast %84 : vector<1x512xf32> to vector<4x512xf32>
    %86 = arith.mulf %83, %85 : vector<4x512xf32>
    %c496_i32_21 = arith.constant 496 : i32
    %87 = tpu.dynamic_rotate %62 by %c496_i32_21 dim 1 : vector<4x512xf32>, i32 -> vector<4x512xf32>
    %88 = vector.extract_strided_slice %0 {offsets = [7, 0], sizes = [1, 512], strides = [1, 1]} : vector<9x512xf32> to vector<1x512xf32>
    %89 = vector.broadcast %88 : vector<1x512xf32> to vector<4x512xf32>
    %90 = arith.mulf %87, %89 : vector<4x512xf32>
    %c495_i32_22 = arith.constant 495 : i32
    %91 = tpu.dynamic_rotate %62 by %c495_i32_22 dim 1 : vector<4x512xf32>, i32 -> vector<4x512xf32>
    %92 = vector.extract_strided_slice %0 {offsets = [8, 0], sizes = [1, 512], strides = [1, 1]} : vector<9x512xf32> to vector<1x512xf32>
    %93 = vector.broadcast %92 : vector<1x512xf32> to vector<4x512xf32>
    %94 = arith.mulf %91, %93 : vector<4x512xf32>
    %c0_23 = arith.constant 0 : index
    %c0_24 = arith.constant 0 : index
    %95 = vector.load %arg2[%c0_23, %c0_24] : memref<4x36xbf16, #tpu.memory_space<vmem>>, vector<4x36xbf16>
    %96 = tpu.concatenate %66, %70, %74, %78, %62, %82, %86, %90, %94 in 0 : vector<4x512xf32>, vector<4x512xf32>, vector<4x512xf32>, vector<4x512xf32>, vector<4x512xf32>, vector<4x512xf32>, vector<4x512xf32>, vector<4x512xf32>, vector<4x512xf32> -> vector<36x512xf32>
    %97 = arith.truncf %96 : vector<36x512xf32> to vector<36x512xbf16>
    %cst_25 = arith.constant dense<0.000000e+00> : vector<4x512xf32>
    %98 = tpu.matmul %95, %97, %cst_25 {dimension_numbers = #tpu.dot_dimension_numbers<[1], [0], [0], [1], [0, 0, 1, 1], [], []>} : vector<4x36xbf16>, vector<36x512xbf16>, vector<4x512xf32> -> vector<4x512xf32>
    %cst_26 = arith.constant dense<0.000000e+00> : vector<4xf32>
    %99 = vector.multi_reduction <add>, %98, %cst_26 [1] : vector<4x512xf32> to vector<4xf32>
    %100 = vector.shape_cast %99 : vector<4xf32> to vector<4x1xf32>
    %101 = arith.mulf %98, %98 : vector<4x512xf32>
    %cst_27 = arith.constant dense<0.000000e+00> : vector<4xf32>
    %102 = vector.multi_reduction <add>, %101, %cst_27 [1] : vector<4x512xf32> to vector<4xf32>
    %103 = vector.shape_cast %102 : vector<4xf32> to vector<4x1xf32>
    %cst_28 = arith.constant 0.001953125 : f32
    %104 = vector.broadcast %cst_28 : f32 to vector<4x1xf32>
    %105 = arith.mulf %100, %104 : vector<4x1xf32>
    %cst_29 = arith.constant 0.001953125 : f32
    %106 = vector.broadcast %cst_29 : f32 to vector<4x1xf32>
    %107 = arith.mulf %103, %106 : vector<4x1xf32>
    %108 = arith.mulf %105, %105 : vector<4x1xf32>
    %109 = arith.subf %107, %108 : vector<4x1xf32>
    %c0_30 = arith.constant 0 : index
    %c0_31 = arith.constant 0 : index
    %110 = vector.load %arg5[%c0_30, %c0_31] : memref<4x1xf32, #tpu.memory_space<vmem>>, vector<4x1xf32>
    %cst_32 = arith.constant 9.99999974E-6 : f32
    %111 = vector.broadcast %cst_32 : f32 to vector<4x1xf32>
    %112 = arith.addf %109, %111 : vector<4x1xf32>
    %113 = math.rsqrt %112 : vector<4x1xf32>
    %114 = arith.mulf %110, %113 : vector<4x1xf32>
    %c0_33 = arith.constant 0 : index
    %c0_34 = arith.constant 0 : index
    %115 = vector.load %arg6[%c0_33, %c0_34] : memref<4x1xf32, #tpu.memory_space<vmem>>, vector<4x1xf32>
    %116 = arith.mulf %105, %114 : vector<4x1xf32>
    %117 = arith.subf %115, %116 : vector<4x1xf32>
    %118 = vector.broadcast %114 : vector<4x1xf32> to vector<4x512xf32>
    %119 = arith.mulf %98, %118 : vector<4x512xf32>
    %120 = vector.broadcast %117 : vector<4x1xf32> to vector<4x512xf32>
    %121 = arith.addf %119, %120 : vector<4x512xf32>
    %122 = arith.addf %121, %1 : vector<4x512xf32>
    %cst_35 = arith.constant 0.000000e+00 : f32
    %123 = vector.broadcast %cst_35 : f32 to vector<4x512xf32>
    %124 = arith.maximumf %122, %123 : vector<4x512xf32>
    %c0_36 = arith.constant 0 : index
    %c0_37 = arith.constant 0 : index
    %125 = vector.load %arg8[%c0_36, %c0_37] : memref<4x512xf32, #tpu.memory_space<vmem>>, vector<4x512xf32>
    tpu.vector_store %arg8[%c0_36, %c0_37], %124 {strides = array<i32>} : memref<4x512xf32, #tpu.memory_space<vmem>>, vector<4x512xf32>,
    return
  }
}

</mosaic_0001>

<bundles_post_ra>
// kernel: tpu_custom_call.1
= control target key start
LH: loop header
LB: loop body
LE: loop exit
PB: predicated region body
PF: predicated region fallthrough
CT: control target
= control target key end

     0   :  { %13 = vsyncpa [#allocation3], 0  ;;  %s1766_s0 = inlined_call_operand.hbm [shape: f32[4,512], index: 0, kind: input, shape index: {}]   ;;  %s1767_s1 = inlined_call_operand.vmem [shape: bf16[4,36], index: 1, kind: input, shape index: {}]   ;;  %s1768_s2 = inlined_call_operand.vmem [shape: bf16[4,36], index: 2, kind: input, shape index: {}]   ;;  %s1769_s3 = inlined_call_operand.vmem [shape: f32[4,1], index: 3, kind: input, shape index: {}]   ;;  %s1770_s4 = inlined_call_operand.vmem [shape: f32[4,1], index: 4, kind: input, shape index: {}]   ;;  %s1771_s5 = inlined_call_operand.vmem [shape: f32[4,1], index: 5, kind: input, shape index: {}]   ;;  %s1772_s6 = inlined_call_operand.vmem [shape: f32[4,1], index: 6, kind: input, shape index: {}]   ;;  %s1773_s7 = inlined_call_operand.hbm [shape: f32[9,512], index: 7, kind: input, shape index: {}]   ;;  %s1774_s8 = inlined_call_operand.hbm [shape: f32[4,512], index: 8, kind: output, shape index: {}]  }
   0x1   :  { %14 = vsyncpa [#allocation6], 0 }
   0x2   :  { %15 = vsyncpa [#allocation4], 0  ;;  %s21_s29 = sshll.u32 %s1766_s0, 4  ;;  %s1044_s30 = smov [#allocation2]   ;;  %s22_s29 = int_to_ptr.hbm [resolvable:$true] %s21_s29 }
   0x3   :  { %s23_s9 = sshll.u32 %s1044_s30, 4  ;;  %s43_s12 = sshll.u32 %s1773_s7, 4  ;;  %s24_s9 = int_to_ptr.vmem [resolvable:$true] %s23_s9  ;;  %s44_s12 = int_to_ptr.hbm [resolvable:$true] %s43_s12 }
   0x4   :  { %26 = dma.hbm_to_vmem [thread:$0]  %s22_s29, 256, %s24_s9, [#allocation3]  }
   0x5   :  { %s1045_s13 = smov [#allocation5]   ;;  %s1046_s15 = smov 512  }
   0x6   :  { %s45_s14 = sshll.u32 %s1045_s13, 4  ;;  %s1047_s16 = smov 32   ;;  %s46_s14 = int_to_ptr.vmem [resolvable:$true] %s45_s14 }
   0x7   :  { %51 = dma.hbm_to_vmem [thread:$0]  %s44_s12, 1024, %s46_s14, [#allocation6], %s1046_s15, %s1046_s15, %s1047_s16  }
   0x8   :  { %1038 = dma.done.wait [#allocation3], 256  }
   0x9   :  { %1039 = vsyncadd [#allocation3], 4294967040 }
   0xa   :  { %1040 = dma.done.wait [#allocation6], 1024  }
   0xb   :  { %1041 = vsyncadd [#allocation6], 4294966272  ;;  %v1109_v0 = vld [vmem:[#allocation2] sm:$0xff]  ;;  %v1111_v1 = vld [vmem:[#allocation2 + $0x8] sm:$0xff]  ;;  %s1048_s0 = smov 17   ;;  %s1049_s7 = smov 16   ;;  %v92_v55 = vlaneseq }
   0xc   :  { %73 = vst [vmem:[#allocation1] ss:$2 sm:$0xff] %v1109_v0  ;;  %s1050_s17 = smov 15   ;;  %s1051_s18 = smov 1   ;;  %v1216_v60 = vld [vmem:[#allocation5 + $0x18] sm:$0xff]  ;;  %v1218_v61 = vld [vmem:[#allocation5 + $0x10] sm:$0xff] }
   0xd   :  { %75 = vst [vmem:[#allocation1 + $0x10] ss:$2 sm:$0xff] %v1111_v1  ;;  %s1052_s19 = smov 127   ;;  %s1053_s20 = smov 113   ;;  %v1210_v57 = vand.u32 127, %v92_v55  ;;  %v102_v62 = vperm.slane %v1216_v60, 0 }
   0xe   :  { %s1054_s21 = smov 112   ;;  %s1055_s22 = smov 111   ;;  %v1778_v63 = vperm.slane %v1218_v61, 0  ;;  %vm391_vm7 = vcmask 1043456   ;;  %vm424_vm8 = vcmask 1041408   ;;  %vm420_vm10 = vcmask 293888  }
   0xf   :  { %vm94_vm0 = vcmp.lt.s32.totalorder %v1210_v57, 17  ;;  %vm126_vm1 = vcmp.lt.s32.totalorder %v1210_v57, 16  ;;  %vm190_vm2 = vcmp.lt.s32.totalorder %v1210_v57, 1  ;;  %vm318_vm3 = vcmp.lt.s32.totalorder %v1210_v57, 111  ;;  %s923_s11 = sshll.u32 %s1774_s8, 4  ;;  %s924_s11 = int_to_ptr.hbm [resolvable:$true] %s923_s11 }
  0x10   :  { %vm158_vm4 = vcmp.lt.s32.totalorder %v1210_v57, 15  ;;  %vm222_vm5 = vcmp.lt.s32.totalorder %v1210_v57, 127  ;;  %vm286_vm6 = vcmp.lt.s32.totalorder %v1210_v57, 112  ;;  %vm254_vm9 = vcmp.lt.s32.totalorder %v1210_v57, 113 }
  0x13   :  { %v77_v2 = vld.sshfl [vmem:[#allocation1 + $0x8] sm:$0xff pattern:$0x75316420]  ;;  %v1115_v3 = vld.sshfl [vmem:[#allocation1] sm:$0xff pattern:$0x75316420] }
  0x14   :  { %86 = vrot.lane.b32.xlu1 %v77_v2, %s1048_s0  ;;  %107 = vst [vmem:[#allocation1] ss:$2 sm:$0xff] %v1109_v0  ;;  %v78_v4 = vld.sshfl [vmem:[#allocation1 + $0x10] sm:$0xff pattern:$0x75316420] }
  0x15   :  { %v79_v5 = vld.sshfl [vmem:[#allocation1 + $0x18] sm:$0xff pattern:$0x75316420]  ;;  %88 = vrot.lane.b32.xlu2 %v78_v4, %s1048_s0 }
  0x16   :  { %109 = vst [vmem:[#allocation1 + $0x10] ss:$2 sm:$0xff] %v1111_v1 }
  0x1b   :  { %v111_v6 = vld.sshfl [vmem:[#allocation1 + $0x8] sm:$0xff pattern:$0x75316420]  ;;  %v1121_v7 = vld.sshfl [vmem:[#allocation1] sm:$0xff pattern:$0x75316420] }
  0x1c   :  { %120 = vrot.lane.b32.xlu0 %v111_v6, %s1049_s7  ;;  %139 = vst [vmem:[#allocation1] ss:$2 sm:$0xff] %v1109_v0 }
  0x1d   :  { %v112_v8 = vld.sshfl [vmem:[#allocation1 + $0x10] sm:$0xff pattern:$0x75316420]  ;;  %90 = vrot.lane.b32.xlu2 %v79_v5, %s1048_s0  ;;  %v113_v9 = vld.sshfl [vmem:[#allocation1 + $0x18] sm:$0xff pattern:$0x75316420] }
  0x1e   :  { %122 = vrot.lane.b32.xlu1 %v112_v8, %s1049_s7  ;;  %141 = vst [vmem:[#allocation1 + $0x10] ss:$2 sm:$0xff] %v1111_v1  ;;  %v1240_v5 = vld [vmem:[#allocation5 + $0x8] sm:$0xff] }
  0x23   :  { %v143_v10 = vld.sshfl [vmem:[#allocation1 + $0x8] sm:$0xff pattern:$0x75316420]  ;;  %v1128_v11 = vld.sshfl [vmem:[#allocation1] sm:$0xff pattern:$0x75316420] }
  0x24   :  { %124 = vrot.lane.b32.xlu0 %v113_v9, %s1049_s7  ;;  %171 = vst [vmem:[#allocation1] ss:$2 sm:$0xff] %v1109_v0  ;;  %v165_v9 = vperm.slane %v1218_v61, 2 }
  0x25   :  { %v144_v12 = vld.sshfl [vmem:[#allocation1 + $0x10] sm:$0xff pattern:$0x75316420]  ;;  %v145_v13 = vld.sshfl [vmem:[#allocation1 + $0x18] sm:$0xff pattern:$0x75316420] }
  0x26   :  { %154 = vrot.lane.b32.xlu2 %v144_v12, %s1050_s17  ;;  %173 = vst [vmem:[#allocation1 + $0x10] ss:$2 sm:$0xff] %v1111_v1  ;;  %152 = vrot.lane.b32.xlu1 %v143_v10, %s1050_s17  ;;  %v229_v10 = vperm.slane %v1218_v61, 5  ;;  %v1777_v12 = vperm.slane %v1240_v5, 5 }
  0x2b   :  { %v174_v14 = vld.sshfl [vmem:[#allocation1] sm:$0xff pattern:$0x75316420]  ;;  %v175_v15 = vld.sshfl [vmem:[#allocation1 + $0x8] sm:$0xff pattern:$0x75316420] }
  0x2c   :  { %203 = vst [vmem:[#allocation1] ss:$2 sm:$0xff] %v1109_v0 }
  0x2d   :  { %v176_v16 = vld.sshfl [vmem:[#allocation1 + $0x10] sm:$0xff pattern:$0x75316420]  ;;  %v177_v17 = vld.sshfl [vmem:[#allocation1 + $0x18] sm:$0xff pattern:$0x75316420] }
  0x2e   :  { %186 = vrot.lane.b32.xlu0 %v176_v16, %s1051_s18  ;;  %205 = vst [vmem:[#allocation1 + $0x10] ss:$2 sm:$0xff] %v1111_v1  ;;  %184 = vrot.lane.b32.xlu2 %v175_v15, %s1051_s18  ;;  %v293_v15 = vperm.slane %v1218_v61, 7 }
  0x33   :  { %v206_v18 = vld.sshfl [vmem:[#allocation1] sm:$0xff pattern:$0x75316420]  ;;  %v207_v19 = vld.sshfl [vmem:[#allocation1 + $0x8] sm:$0xff pattern:$0x75316420] }
  0x34   :  { %235 = vst [vmem:[#allocation1] ss:$2 sm:$0xff] %v1109_v0 }
  0x35   :  { %v208_v20 = vld.sshfl [vmem:[#allocation1 + $0x10] sm:$0xff pattern:$0x75316420]  ;;  %v209_v21 = vld.sshfl [vmem:[#allocation1 + $0x18] sm:$0xff pattern:$0x75316420] }
  0x36   :  { %188 = vrot.lane.b32.xlu0 %v177_v17, %s1051_s18  ;;  %218 = vrot.lane.b32.xlu1 %v208_v20, %s1052_s19  ;;  %237 = vst [vmem:[#allocation1 + $0x10] ss:$2 sm:$0xff] %v1111_v1 }
  0x3b   :  { %v238_v22 = vld.sshfl [vmem:[#allocation1] sm:$0xff pattern:$0x75316420]  ;;  %v239_v23 = vld.sshfl [vmem:[#allocation1 + $0x8] sm:$0xff pattern:$0x75316420] }
  0x3c   :  { %267 = vst [vmem:[#allocation1] ss:$2 sm:$0xff] %v1109_v0 }
  0x3d   :  { %v241_v24 = vld.sshfl [vmem:[#allocation1 + $0x18] sm:$0xff pattern:$0x75316420]  ;;  %v240_v25 = vld.sshfl [vmem:[#allocation1 + $0x10] sm:$0xff pattern:$0x75316420] }
  0x3e   :  { %252 = vrot.lane.b32.xlu0 %v241_v24, %s1053_s20  ;;  %220 = vrot.lane.b32.xlu1 %v209_v21, %s1052_s19  ;;  %269 = vst [vmem:[#allocation1 + $0x10] ss:$2 sm:$0xff] %v1111_v1  ;;  %v1776_v21 = vperm.slane %v1240_v5, 7 }
  0x3f   :  { %250 = vrot.lane.b32.xlu2 %v240_v25, %s1053_s20 }
  0x43   :  { %v271_v26 = vld.sshfl [vmem:[#allocation1 + $0x8] sm:$0xff pattern:$0x75316420]  ;;  %v270_v27 = vld.sshfl [vmem:[#allocation1] sm:$0xff pattern:$0x75316420] }
  0x44   :  { %299 = vst [vmem:[#allocation1] ss:$2 sm:$0xff] %v1109_v0 }
  0x45   :  { %v272_v28 = vld.sshfl [vmem:[#allocation1 + $0x10] sm:$0xff pattern:$0x75316420]  ;;  %v273_v29 = vld.sshfl [vmem:[#allocation1 + $0x18] sm:$0xff pattern:$0x75316420] }
  0x46   :  { %214 = vrot.lane.b32.xlu1 %v206_v18, %s1052_s19  ;;  %280 = vrot.lane.b32.xlu0 %v271_v26, %s1054_s21  ;;  %301 = vst [vmem:[#allocation1 + $0x10] ss:$2 sm:$0xff] %v1111_v1 }
  0x47   :  { %246 = vrot.lane.b32.xlu2 %v238_v22, %s1053_s20 }
  0x4b   :  { %v303_v30 = vld.sshfl [vmem:[#allocation1 + $0x8] sm:$0xff pattern:$0x75316420]  ;;  %v302_v31 = vld.sshfl [vmem:[#allocation1] sm:$0xff pattern:$0x75316420] }
  0x4c   :  { %356 = vst [vmem:[#allocation1] ss:$2 sm:$0xff] %v1109_v0 }
  0x4d   :  { %v304_v32 = vld.sshfl [vmem:[#allocation1 + $0x10] sm:$0xff pattern:$0x75316420]  ;;  %v305_v33 = vld.sshfl [vmem:[#allocation1 + $0x18] sm:$0xff pattern:$0x75316420] }
  0x4e   :  { %216 = vrot.lane.b32.xlu1 %v207_v19, %s1052_s19  ;;  %314 = vrot.lane.b32.xlu0 %v304_v32, %s1055_s22  ;;  %358 = vst [vmem:[#allocation1 + $0x10] ss:$2 sm:$0xff] %v1111_v1  ;;  %v261_v32 = vperm.slane %v1218_v61, 6 }
  0x4f   :  { %282 = vrot.lane.b32.xlu2 %v272_v28, %s1054_s21 }
  0x53   :  { %v1197_v48 = vld.sshfl [vmem:[#allocation1 + $0x8] sm:$0xff pattern:$0x75316420]  ;;  %v1199_v49 = vld.sshfl [vmem:[#allocation1] sm:$0xff pattern:$0x75316420] }
  0x54   :  { %885 = vst [vmem:[#allocation1] ss:$2 sm:$0xff] %v1109_v0  ;;  %v133_v0 = vperm.slane %v1218_v61, 1 }
  0x55   :  { %v1188_v44 = vld.sshfl [vmem:[#allocation1 + $0x10] sm:$0xff pattern:$0x75316420]  ;;  %v1190_v45 = vld.sshfl [vmem:[#allocation1 + $0x18] sm:$0xff pattern:$0x75316420] }
  0x56   :  { %248 = vrot.lane.b32.xlu1 %v239_v23, %s1053_s20  ;;  %316 = vrot.lane.b32.xlu0 %v305_v33, %s1055_s22  ;;  %887 = vst [vmem:[#allocation1 + $0x10] ss:$2 sm:$0xff] %v1111_v1  ;;  %v1775_v1 = vperm.slane %v1216_v60, 1  ;;  %v198_v23 = vperm.slane %v1216_v60, 3  ;;  %v262_v33 = vperm.slane %v1216_v60, 6 }
  0x57   :  { %284 = vrot.lane.b32.xlu2 %v273_v29, %s1054_s21 }
  0x5e   :  { %278 = vrot.lane.b32.xlu1 %v270_v27, %s1054_s21  ;;  %310 = vrot.lane.b32.xlu0 %v302_v31, %s1055_s22 }
  0x5f   :  { %312 = vrot.lane.b32.xlu2 %v303_v30, %s1055_s22 }
  0x66   :  { %156 = vrot.lane.b32.xlu1 %v145_v13, %s1050_s17  ;;  %118 = vrot.lane.b32.xlu0 %v1121_v7, %s1049_s7  ;;  %v1244_v7 = vld [vmem:[#allocation5 + $0x28] ss:$0 sm:$0xff] }
  0x67   :  { %182 = vrot.lane.b32.xlu2 %v174_v14, %s1051_s18 }
  0x6e   :  { %150 = vrot.lane.b32.xlu1 %v1128_v11, %s1050_s17  ;;  %84 = vrot.lane.b32.xlu0 %v1115_v3, %s1048_s0  ;;  %v197_v3 = vperm.slane %v1218_v61, 3 }
  0x6f   :  { %v89_v34 = vpop.permute.xlu2 %88 }
  0x77   :  { %v1172_v35 = vpop.permute.xlu2 %90 }
  0x78   :  { %v1229_v2 = vsel %vm94_vm0, %v89_v34, %v1172_v35 }
  0x80   :  { %v1174_v36 = vpop.permute.xlu2 %154 }
  0x86   :  { %v1176_v37 = vpop.permute.xlu1 %86 }
  0x87   :  { %v96_v4 = vsel %vm94_vm0, %v1176_v37, %v89_v34 }
  0x88   :  { %v1180_v39 = vpop.permute.xlu2 %184  ;;  %v105_v18 = vmul.f32 %v1778_v63, %v96_v4 }
  0x8e   :  { %v1178_v38 = vpop.permute.xlu0 %120 }
  0x90   :  { %v123_v40 = vpop.permute.xlu1 %122 }
  0x91   :  { %v128_v8 = vsel %vm126_vm1, %v1178_v38, %v123_v40 }
  0x92   :  { %v137_v22 = vmul.f32 %v133_v0, %v128_v8 }
  0x96   :  { %v1182_v41 = vpop.permute.xlu0 %124 }
  0x97   :  { %v127_v14 = vsel %vm126_vm1, %v123_v40, %v1182_v41  ;;  %v1779_v40 = vperm.slane %v1240_v5, 6 }
  0x98   :  { %v1186_v43 = vpop.permute.xlu1 %152  ;;  %v1279_v26 = vmul.f32 %v1775_v1, %v127_v14 }
  0x99   :  { %v1184_v42 = vpop.permute.xlu2 %250  ;;  %v160_v4 = vsel %vm158_vm4, %v1186_v43, %v1174_v36 }
  0x9a   :  { %v339_v14 = vrot.slane %v1279_v26, 4  ;;  %v164_v26 = vperm.slane %v1240_v5, 2 }
  0xa0   :  { %v1193_v46 = vpop.permute.xlu0 %186 }
  0xa1   :  { %v1195_v47 = vpop.permute.xlu2 %246  ;;  %v192_v27 = vsel %vm190_vm2, %v1180_v39, %v1193_v46 }
  0xa2   :  { %v201_v55 = vmul.f32 %v197_v3, %v192_v27 }
  0xa8   :  { %v1202_v50 = vpop.permute.xlu0 %188  ;;  %v219_v51 = vpop.permute.xlu1 %218 }
  0xa9   :  { %v283_v52 = vpop.permute.xlu2 %282 }
  0xb0   :  { %v1204_v53 = vpop.permute.xlu0 %252  ;;  %v1206_v54 = vpop.permute.xlu1 %220 }
  0xb1   :  { %v1208_v56 = vpop.permute.xlu2 %284  ;;  %v223_v19 = vsel %vm222_vm5, %v219_v51, %v1206_v54 }
  0xb2   :  { %v287_v20 = vsel %vm286_vm6, %v283_v52, %v1208_v56  ;;  %v233_v29 = vmul.f32 %v229_v10, %v223_v19  ;;  %v1312_v19 = vld [vmem:[#allocation5] sm:$0xff] }
  0xb3   :  { %v297_v30 = vmul.f32 %v293_v15, %v287_v20 }
  0xb5   :  { %v385_v27 = vrot.slane %v297_v30, 4 }
  0xb8   :  { %v1212_v58 = vpop.permute.xlu1 %214  ;;  %v1214_v59 = vpop.permute.xlu0 %280 }
  0xb9   :  { %v1242_v6 = vpop.permute.xlu2 %312  ;;  %v288_v24 = vsel %vm286_vm6, %v1214_v59, %v283_v52  ;;  %v338_v52 = vrot.slane %v137_v22, 4 }
  0xba   :  { %v296_v34 = vmul.f32 %v1776_v21, %v288_v24  ;;  %v169_v21 = vmul.f32 %v165_v9, %v160_v4 }
  0xc0   :  { %v217_v11 = vpop.permute.xlu1 %216  ;;  %v315_v13 = vpop.permute.xlu0 %314 }
  0xc1   :  { %v224_v16 = vsel %vm222_vm5, %v217_v11, %v219_v51  ;;  %v320_v17 = vsel %vm318_vm3, %v1242_v6, %v315_v13  ;;  %v1297_v51 = vld [vmem:[#allocation5 + $0x30] ss:$0 sm:$0xff]  ;;  %v225_v30 = vsel %vm222_vm5, %v1212_v58, %v217_v11  ;;  %v1348_v11 = vld [vmem:[#allocation5 + $0x20] ss:$0 sm:$0xff] }
  0xc2   :  { %v328_v25 = vmul.f32 %v1244_v7, %v320_v17  ;;  %v232_v28 = vmul.f32 %v1777_v12, %v224_v16  ;;  %v255_v16 = vsel %vm254_vm9, %v1184_v42, %v1204_v53  ;;  %v230_v17 = vperm.slane %v1216_v60, 5 }
  0xc3   :  { %v384_v12 = vrot.slane %v296_v34, 4 }
  0xc4   :  { %v417_v31 = vpack.c.bf16 %v328_v25, %v328_v25  ;;  %v372_v20 = vrot.slane %v232_v28, 4  ;;  %v373_v25 = vrot.slane %v233_v29, 4  ;;  %v265_v29 = vmul.f32 %v261_v32, %v255_v16 }
  0xc5   :  { %v291_v16 = vperm.slane %v1312_v19, 7 }
  0xc6   :  { %v429_v8 = vsel %vm424_vm8, %v417_v31, 0  ;;  %v401_v34 = vsel %vm391_vm7, %v1197_v48, %v372_v20  ;;  %v294_v48 = vperm.slane %v1216_v60, 7 }
  0xc7   :  { %455 = vmatpush.bf16.msra.mxu1 %v429_v8  ;;  %v350_v8 = vrot.slane %v201_v55, 4 }
  0xc8   :  { %v249_v22 = vpop.permute.xlu1 %248  ;;  %v317_v24 = vpop.permute.xlu0 %316 }
  0xc9   :  { %v256_v31 = vsel %vm254_vm9, %v249_v22, %v1184_v42  ;;  %v319_v1 = vsel %vm318_vm3, %v315_v13, %v317_v24  ;;  %v226_v42 = vsel %vm222_vm5, %v1206_v54, %v1212_v58  ;;  %v227_v13 = vperm.slane %v1312_v19, 5 }
  0xca   :  { %v264_v63 = vmul.f32 %v1779_v40, %v256_v31  ;;  %v329_v28 = vmul.f32 %v1297_v51, %v319_v1  ;;  %v402_v31 = vsel %vm391_vm7, %v1188_v44, %v373_v25  ;;  %v406_v54 = vsel %vm391_vm7, %v265_v29, %v385_v27 }
  0xcb   :  { %v1344_v40 = vmul.f32 %v102_v62, %v1229_v2  ;;  %v234_v44 = vmul.f32 %v230_v17, %v226_v42  ;;  %v231_v20 = vmul.f32 %v227_v13, %v225_v30  ;;  %v259_v25 = vperm.slane %v1312_v19, 6 }
  0xcc   :  { %v405_v1 = vsel %vm391_vm7, %v264_v63, %v384_v12  ;;  %v418_v55 = vpack.c.bf16 %v329_v28, %v329_v28  ;;  %v394_v63 = vsel %vm391_vm7, %v105_v18, %v338_v52  ;;  %v1351_v12 = vld [vmem:[#allocation5 + $0x38] ss:$0 sm:$0xff]  ;;  %v398_v2 = vsel %vm391_vm7, %v169_v21, %v350_v8 }
  0xcd   :  { %v413_v4 = vpack.c.bf16 %v405_v1, %v401_v34  ;;  %v191_v27 = vsel %vm190_vm2, %v1193_v46, %v1202_v50  ;;  %v258_v18 = vsel %vm254_vm9, %v1204_v53, %v1195_v47  ;;  %v257_v52 = vsel %vm254_vm9, %v1195_v47, %v249_v22 }
  0xce   :  { %v432_v58 = vsel %vm424_vm8, %v418_v55, 0  ;;  %v414_v42 = vpack.c.bf16 %v406_v54, %v402_v31  ;;  %v374_v34 = vrot.slane %v234_v44, 4  ;;  %v371_v1 = vrot.slane %v231_v20, 4 }
  0xcf   :  { %456 = vmatpush.bf16.msra.mxu1 %v413_v4  ;;  %468 = vmatpush.bf16.msra.mxu2 %v432_v58  ;;  %v202_v54 = vmul.f32 %v198_v23, %v191_v27  ;;  %v266_v58 = vmul.f32 %v262_v33, %v258_v18  ;;  %v196_v44 = vperm.slane %v1240_v5, 3  ;;  %v410_v20 = vpack.c.bf16 %v398_v2, %v394_v63  ;;  %v331_v63 = vld [vmem:[%s1767_s1] sm:$0x3] }
  0xd0   :  { %v279_v28 = vpop.permute.xlu1 %278  ;;  %v311_v29 = vpop.permute.xlu0 %310  ;;  %v132_v27 = vperm.slane %v1240_v5, 1 }
  0xd1   :  { %v289_v21 = vsel %vm286_vm6, %v279_v28, %v1214_v59  ;;  %v290_v46 = vsel %vm286_vm6, %v1208_v56, %v279_v28  ;;  %v321_v8 = vsel %vm318_vm3, %v311_v29, %v1242_v6  ;;  %v322_v53 = vsel %vm318_vm3, %v317_v24, %v311_v29  ;;  %v183_v28 = vpop.permute.xlu2 %182 }
  0xd2   :  { %v295_v47 = vmul.f32 %v291_v16, %v289_v21  ;;  %v298_v22 = vmul.f32 %v294_v48, %v290_v46  ;;  %v327_v30 = vmul.f32 %v1348_v11, %v321_v8  ;;  %v330_v59 = vmul.f32 %v1351_v12, %v322_v53 }
  0xd3   :  { %v195_v56 = vperm.slane %v1312_v19, 3  ;;  %v263_v6 = vmul.f32 %v259_v25, %v257_v52  ;;  %469 = vmatpush.bf16.msra.mxu2 %v414_v42  ;;  %v166_v52 = vperm.slane %v1216_v60, 2  ;;  %v131_v46 = vperm.slane %v1312_v19, 1 }
  0xd4   :  { %v383_v55 = vrot.slane %v295_v47, 4  ;;  %v386_v24 = vrot.slane %v298_v22, 4  ;;  %v416_v4 = vpack.c.bf16 %v327_v30, %v327_v30  ;;  %v419_v31 = vpack.c.bf16 %v330_v59, %v330_v59 }
  0xd5   :  { %v193_v2 = vsel %vm190_vm2, %v183_v28, %v1180_v39  ;;  %v194_v8 = vsel %vm190_vm2, %v1202_v50, %v183_v28  ;;  %v400_v22 = vsel %vm391_vm7, %v1199_v49, %v371_v1  ;;  %v403_v30 = vsel %vm391_vm7, %v1190_v45, %v374_v34 }
  0xd6   :  { %v426_v29 = vsel %vm424_vm8, %v416_v4, 0  ;;  %v435_v21 = vsel %vm424_vm8, %v419_v31, 0  ;;  %v404_v42 = vsel %vm391_vm7, %v263_v6, %v383_v55  ;;  %v407_v18 = vsel %vm391_vm7, %v266_v58, %v386_v24 }
  0xd7   :  { %442 = vmatpush.bf16.msra.mxu0 %v426_v29  ;;  %470 = vmatpush.bf16.msra.mxu2 %v410_v20  ;;  %v412_v6 = vpack.c.bf16 %v404_v42, %v400_v22  ;;  %v351_v55 = vrot.slane %v202_v54, 4  ;;  %v415_v1 = vpack.c.bf16 %v407_v18, %v403_v30  ;;  %v199_v45 = vmul.f32 %v195_v56, %v194_v8 }
  0xd8   :  { %481 = vmatpush.bf16.msra.mxu3 %v435_v21  ;;  %v157_v53 = vpop.permute.xlu1 %156  ;;  %v119_v47 = vpop.permute.xlu0 %118  ;;  %v163_v31 = vperm.slane %v1312_v19, 2  ;;  %v99_v54 = vperm.slane %v1312_v19, 0 }
  0xd9   :  { %v159_v59 = vsel %vm158_vm4, %v1174_v36, %v157_v53  ;;  %v129_v39 = vsel %vm126_vm1, %v119_v47, %v1178_v38  ;;  %v130_v50 = vsel %vm126_vm1, %v1182_v41, %v119_v47  ;;  %v395_v36 = vsel %vm391_vm7, %v1344_v40, %v339_v14 }
  0xda   :  { %v170_v49 = vmul.f32 %v166_v52, %v159_v59  ;;  %936 = vmatmul.msk.bf16.vlgmr.msra.gmra.mxu2 %vm420_vm10, %v331_v63  ;;  %v200_v38 = vmul.f32 %v196_v44, %v193_v2  ;;  %v135_v41 = vmul.f32 %v131_v46, %v130_v50  ;;  %v136_v34 = vmul.f32 %v132_v27, %v129_v39 }
  0xdb   :  { %443 = vmatpush.bf16.msra.mxu0 %v412_v6  ;;  %v100_v40 = vperm.slane %v1240_v5, 0  ;;  %v348_v14 = vrot.slane %v199_v45, 4 }
  0xdc   :  { %482 = vmatpush.bf16.msra.mxu3 %v415_v1  ;;  %v399_v24 = vsel %vm391_vm7, %v170_v49, %v351_v55  ;;  %v349_v58 = vrot.slane %v200_v38, 4  ;;  %v336_v28 = vrot.slane %v135_v41, 4  ;;  %v337_v20 = vrot.slane %v136_v34, 4 }
  0xdd   :  { %v411_v4 = vpack.c.bf16 %v399_v24, %v395_v36 }
  0xe0   :  { %483 = vmatpush.bf16.msra.mxu3 %v411_v4  ;;  %v151_v29 = vpop.permute.xlu1 %150  ;;  %v85_v21 = vpop.permute.xlu0 %84 }
  0xe1   :  { %v161_v42 = vsel %vm158_vm4, %v151_v29, %v1186_v43  ;;  %v162_v18 = vsel %vm158_vm4, %v157_v53, %v151_v29  ;;  %v97_v2 = vsel %vm94_vm0, %v85_v21, %v1176_v37  ;;  %v98_v8 = vsel %vm94_vm0, %v1172_v35, %v85_v21 }
  0xe2   :  { %v167_v47 = vmul.f32 %v163_v31, %v162_v18  ;;  %v168_v22 = vmul.f32 %v164_v26, %v161_v42  ;;  %v103_v43 = vmul.f32 %v99_v54, %v98_v8  ;;  %v104_v53 = vmul.f32 %v100_v40, %v97_v2 }
  0xe3   :  { %937 = vmatmul.msk.bf16.vlgmr.msra.gmra.mxu3 %vm420_vm10, %v331_v63 }
  0xe4   :  { %v392_v37 = vsel %vm391_vm7, %v103_v43, %v336_v28  ;;  %v396_v30 = vsel %vm391_vm7, %v167_v47, %v348_v14  ;;  %v393_v35 = vsel %vm391_vm7, %v104_v53, %v337_v20  ;;  %v397_v59 = vsel %vm391_vm7, %v168_v22, %v349_v58 }
  0xe5   :  { %v408_v39 = vpack.c.bf16 %v396_v30, %v392_v37  ;;  %v409_v50 = vpack.c.bf16 %v397_v59, %v393_v35  ;;  %v1056_v37 = vmov 0  }
  0xe6   :  { %956 = vset.pattern.permute.xlu1 %v1056_v37  ;;  %957 = vset.pattern.permute.xlu0 %v1056_v37 }
  0xe7   :  { %444 = vmatpush.bf16.msra.mxu0 %v408_v39  ;;  %457 = vmatpush.bf16.msra.mxu1 %v409_v50 }
  0xea   :  { %934 = vmatmul.msk.bf16.vlgmr.msra.gmra.mxu0 %vm420_vm10, %v331_v63  ;;  %935 = vmatmul.msk.bf16.vlgmr.msra.gmra.mxu1 %vm420_vm10, %v331_v63 }
 0x15d   :  { %v472_v6 = vpop.f32.mrf.mxu2 }
 0x15e   :  { %v500_v49 = vmul.f32 %v472_v6, %v472_v6  ;;  %v492_v45 = vsel %vm391_vm7, %v472_v6, 0.0 }
 0x160   :  { %v505_v29 = vsel %vm391_vm7, %v500_v49, 0.0 }
 0x165   :  { %v474_v55 = vpop.f32.mrf.mxu2 }
 0x166   :  { %v485_v1 = vpop.f32.mrf.mxu3 }
 0x167   :  { %v501_v36 = vmul.f32 %v485_v1, %v485_v1  ;;  %v1471_v38 = vpop.f32.mrf.mxu0  ;;  %v459_v41 = vpop.f32.mrf.mxu1  ;;  %v494_v20 = vsel %vm391_vm7, %v485_v1, 0.0 }
 0x168   :  { %v489_v34 = vsel %vm391_vm7, %v1471_v38, 0.0  ;;  %v498_v24 = vmul.f32 %v1471_v38, %v1471_v38  ;;  %v490_v4 = vsel %vm391_vm7, %v459_v41, 0.0  ;;  %v499_v14 = vmul.f32 %v459_v41, %v459_v41 }
 0x169   :  { %v491_v63 = vadd.f32 %v490_v4, %v489_v34  ;;  %v507_v18 = vsel %vm391_vm7, %v501_v36, 0.0 }
 0x16a   :  { %v502_v58 = vsel %vm391_vm7, %v498_v24, 0.0  ;;  %v503_v28 = vsel %vm391_vm7, %v499_v14, 0.0  ;;  %v515_v14 = vld [vmem:[%s1769_s3] sm:$0xf] }
 0x16b   :  { %v493_v21 = vadd.f32 %v492_v45, %v491_v63  ;;  %v504_v42 = vadd.f32 %v503_v28, %v502_v58 }
 0x16d   :  { %v495_v2 = vadd.f32 %v494_v20, %v493_v21  ;;  %v506_v8 = vadd.f32 %v505_v29, %v504_v42  ;;  %v528_v29 = vld [vmem:[%s1770_s4] sm:$0xf] }
 0x16e   :  { %v487_v47 = vpop.f32.mrf.mxu3 }
 0x16f   :  { %v461_v22 = vpop.f32.mrf.mxu1  ;;  %496 = vadd.xlane.f32.xlu2 %v495_v2  ;;  %v448_v43 = vpop.f32.mrf.mxu0  ;;  %v508_v53 = vadd.f32 %v507_v18, %v506_v8 }
 0x171   :  { %509 = vadd.xlane.f32.xlu0 %v508_v53 }
 0x1e2   :  { %v497_v30 = vpop.xlane.xlu2 %496 }
 0x1e3   :  { %v511_v35 = vmul.f32 0.001953125, %v497_v30 }
 0x1e4   :  { %v510_v59 = vpop.xlane.xlu0 %509 }
 0x1e5   :  { %v513_v39 = vmul.f32 %v511_v35, %v511_v35  ;;  %v512_v50 = vmul.f32 0.001953125, %v510_v59 }
 0x1e7   :  { %v514_v55 = vsub.f32 %v512_v50, %v513_v39 }
 0x1e9   :  { %v516_v49 = vadd.f32 1e-05, %v514_v55 }
 0x1eb   :  { %962 = vrsqrt.f32 %v516_v49  ;;  %vm523_vm12 = vweird.f32 %v516_v49 }
 0x1f1   :  { %v963_v45 = vpop.eup %962 }
 0x1f2   :  { %v518_v36 = vmul.f32 %v963_v45, %v516_v49  ;;  %vm524_vm11 = vweird.f32 %v963_v45 }
 0x1f3   :  { %vm525_vm13 = vmor %vm523_vm12, %vm524_vm11 }
 0x1f4   :  { %v519_v34 = vmul.f32 %v963_v45, %v518_v36 }
 0x1f6   :  { %v520_v24 = vmul.f32 0.5, %v519_v34 }
 0x1f8   :  { %v521_v4 = vsub.f32 1.5, %v520_v24 }
 0x1fa   :  { %v522_v63 = vmul.f32 %v963_v45, %v521_v4 }
 0x1fc   :  { %v526_v58 = vsel %vm525_vm13, %v963_v45, %v522_v63 }
 0x1fd   :  { %v527_v28 = vmul.f32 %v526_v58, %v515_v14 }
 0x1ff   :  { %533 = vperm.xlu1 %956, %v527_v28   ;;  %v529_v20 = vmul.f32 %v527_v28, %v511_v35 }
 0x201   :  { %v530_v21 = vsub.f32 %v528_v29, %v529_v20 }
 0x207   :  { %542 = vperm.xlu1 %956, %v530_v21  }
 0x271   :  { %v534_v42 = vpop.permute.xlu1 %533 }
 0x272   :  { %v538_v18 = vmul.f32 %v534_v42, %v472_v6  ;;  %v539_v2 = vmul.f32 %v534_v42, %v485_v1  ;;  %v537_v37 = vmul.f32 %v534_v42, %v459_v41  ;;  %v536_v41 = vmul.f32 %v534_v42, %v1471_v38 }
 0x279   :  { %v543_v8 = vpop.permute.xlu1 %542 }
 0x27a   :  { %v547_v47 = vadd.f32 %v543_v8, %v538_v18  ;;  %v548_v22 = vadd.f32 %v543_v8, %v539_v2  ;;  %v546_v6 = vadd.f32 %v543_v8, %v537_v37  ;;  %v545_v30 = vadd.f32 %v543_v8, %v536_v41 }
 0x27c   :  { %v1489_v43 = vmax.f32 %v547_v47, 0.0  ;;  %v1491_v53 = vmax.f32 %v548_v22, 0.0  ;;  %v1505_v1 = vmax.f32 %v546_v6, 0.0  ;;  %v1520_v35 = vmax.f32 %v545_v30, 0.0 }
 0x27e   :  { %655 = vrot.lane.b32.xlu0 %v1491_v53, %s1054_s21  ;;  %623 = vrot.lane.b32.xlu2 %v1491_v53, %s1052_s19 }
 0x27f   :  { %669 = vrot.lane.b32.xlu1 %v1489_v43, %s1055_s22 }
 0x286   :  { %639 = vrot.lane.b32.xlu0 %v1491_v53, %s1053_s20  ;;  %637 = vrot.lane.b32.xlu2 %v1489_v43, %s1053_s20 }
 0x287   :  { %671 = vrot.lane.b32.xlu1 %v1491_v53, %s1055_s22 }
 0x28e   :  { %571 = vrot.lane.b32.xlu0 %v1505_v1, %s1049_s7  ;;  %667 = vrot.lane.b32.xlu2 %v1505_v1, %s1055_s22 }
 0x28f   :  { %621 = vrot.lane.b32.xlu1 %v1489_v43, %s1052_s19 }
 0x296   :  { %605 = vrot.lane.b32.xlu0 %v1489_v43, %s1051_s18  ;;  %603 = vrot.lane.b32.xlu2 %v1505_v1, %s1051_s18 }
 0x297   :  { %653 = vrot.lane.b32.xlu1 %v1489_v43, %s1054_s21 }
 0x29e   :  { %651 = vrot.lane.b32.xlu0 %v1505_v1, %s1054_s21  ;;  %633 = vrot.lane.b32.xlu2 %v1520_v35, %s1053_s20 }
 0x29f   :  { %665 = vrot.lane.b32.xlu1 %v1520_v35, %s1055_s22 }
 0x2a6   :  { %575 = vrot.lane.b32.xlu0 %v1491_v53, %s1049_s7  ;;  %557 = vrot.lane.b32.xlu2 %v1489_v43, %s1048_s0 }
 0x2a7   :  { %617 = vrot.lane.b32.xlu1 %v1520_v35, %s1052_s19 }
 0x2ae   :  { %607 = vrot.lane.b32.xlu0 %v1491_v53, %s1051_s18  ;;  %589 = vrot.lane.b32.xlu2 %v1489_v43, %s1050_s17 }
 0x2af   :  { %649 = vrot.lane.b32.xlu1 %v1520_v35, %s1054_s21 }
 0x2b6   :  { %569 = vrot.lane.b32.xlu0 %v1520_v35, %s1049_s7  ;;  %559 = vrot.lane.b32.xlu2 %v1491_v53, %s1048_s0 }
 0x2b7   :  { %573 = vrot.lane.b32.xlu1 %v1489_v43, %s1049_s7 }
 0x2be   :  { %553 = vrot.lane.b32.xlu0 %v1520_v35, %s1048_s0  ;;  %601 = vrot.lane.b32.xlu2 %v1520_v35, %s1051_s18 }
 0x2bf   :  { %619 = vrot.lane.b32.xlu1 %v1505_v1, %s1052_s19 }
 0x2c7   :  { %555 = vrot.lane.b32.xlu1 %v1505_v1, %s1048_s0 }
 0x2cf   :  { %587 = vrot.lane.b32.xlu1 %v1505_v1, %s1050_s17 }
 0x2d7   :  { %635 = vrot.lane.b32.xlu1 %v1505_v1, %s1053_s20 }
 0x2d8   :  { %v624_v38 = vpop.permute.xlu2 %623 }
 0x2df   :  { %591 = vrot.lane.b32.xlu1 %v1491_v53, %s1050_s17 }
 0x2e0   :  { %v1560_v59 = vpop.permute.xlu2 %637 }
 0x2e7   :  { %585 = vrot.lane.b32.xlu1 %v1520_v35, %s1050_s17 }
 0x2e8   :  { %v668_v39 = vpop.permute.xlu2 %667 }
 0x2f0   :  { %v656_v14 = vpop.permute.xlu0 %655 }
 0x2f1   :  { %v670_v50 = vpop.permute.xlu1 %669 }
 0x2f2   :  { %v674_v55 = vsel %vm318_vm3, %v668_v39, %v670_v50 }
 0x2f3   :  { %v678_v49 = vmul.f32 %v1244_v7, %v674_v55 }
 0x2f5   :  { %v755_v45 = vpack.c.bf16 %v678_v49, %v678_v49 }
 0x2f7   :  { %v765_v36 = vsel %vm424_vm8, %v755_v45, 0 }
 0x2f8   :  { %791 = vmatpush.bf16.msrb.mxu1 %v765_v36  ;;  %v640_v7 = vpop.permute.xlu0 %639 }
 0x2f9   :  { %v672_v34 = vpop.permute.xlu1 %671  ;;  %v641_v42 = vsel %vm254_vm9, %v1560_v59, %v640_v7 }
 0x2fa   :  { %v673_v24 = vsel %vm318_vm3, %v670_v50, %v672_v34  ;;  %v647_v8 = vmul.f32 %v641_v42, %v261_v32  ;;  %v1594_v32 = vpop.permute.xlu2 %603 }
 0x2fb   :  { %v679_v4 = vmul.f32 %v1297_v51, %v673_v24 }
 0x2fd   :  { %v756_v63 = vpack.c.bf16 %v679_v4, %v679_v4 }
 0x2ff   :  { %v768_v58 = vsel %vm424_vm8, %v756_v63, 0 }
 0x300   :  { %804 = vmatpush.bf16.msrb.mxu2 %v768_v58 }
 0x301   :  { %v622_v28 = vpop.permute.xlu1 %621 }
 0x302   :  { %v625_v20 = vsel %vm222_vm5, %v622_v28, %v624_v38  ;;  %v634_v24 = vpop.permute.xlu2 %633 }
 0x303   :  { %v631_v29 = vmul.f32 %v625_v20, %v229_v10  ;;  %v644_v63 = vsel %vm254_vm9, %v640_v7, %v634_v24 }
 0x304   :  { %v648_v42 = vmul.f32 %v644_v63, %v262_v33 }
 0x305   :  { %v712_v18 = vrot.slane %v631_v29, 4 }
 0x307   :  { %v740_v22 = vsel %vm391_vm7, %v1489_v43, %v712_v18  ;;  %v1596_v43 = vpop.permute.xlu0 %571 }
 0x309   :  { %v654_v21 = vpop.permute.xlu1 %653 }
 0x30a   :  { %v657_v51 = vsel %vm286_vm6, %v654_v21, %v656_v14 }
 0x30b   :  { %v663_v2 = vmul.f32 %v657_v51, %v293_v15 }
 0x30d   :  { %v724_v47 = vrot.slane %v663_v2, 4 }
 0x30f   :  { %v744_v10 = vsel %vm391_vm7, %v647_v8, %v724_v47  ;;  %v558_v8 = vpop.permute.xlu2 %557 }
 0x310   :  { %v752_v37 = vpack.c.bf16 %v744_v10, %v740_v22 }
 0x311   :  { %v666_v6 = vpop.permute.xlu1 %665 }
 0x312   :  { %v675_v41 = vsel %vm318_vm3, %v666_v6, %v668_v39  ;;  %v676_v30 = vsel %vm318_vm3, %v672_v34, %v666_v6  ;;  %805 = vmatpush.bf16.msrb.mxu2 %v752_v37 }
 0x313   :  { %v677_v15 = vmul.f32 %v1348_v11, %v675_v41  ;;  %v680_v50 = vmul.f32 %v1351_v12, %v676_v30  ;;  %v606_v12 = vpop.permute.xlu0 %605  ;;  %v1780_v30 = vperm.slane %v1218_v61, 0  ;;  %v1782_v61 = vperm.slane %v1240_v5, 7 }
 0x314   :  { %v610_v33 = vsel %vm190_vm2, %v1594_v32, %v606_v12 }
 0x315   :  { %v754_v55 = vpack.c.bf16 %v677_v15, %v677_v15  ;;  %v757_v49 = vpack.c.bf16 %v680_v50, %v680_v50  ;;  %v615_v37 = vmul.f32 %v610_v33, %v197_v3 }
 0x317   :  { %v762_v45 = vsel %vm424_vm8, %v754_v55, 0  ;;  %v771_v36 = vsel %vm424_vm8, %v757_v49, 0  ;;  %v700_v3 = vrot.slane %v615_v37, 4 }
 0x318   :  { %778 = vmatpush.bf16.msrb.mxu0 %v762_v45  ;;  %817 = vmatpush.bf16.msrb.mxu3 %v771_v36 }
 0x319   :  { %v618_v39 = vpop.permute.xlu1 %617 }
 0x31a   :  { %v628_v34 = vsel %vm222_vm5, %v624_v38, %v618_v39 }
 0x31b   :  { %v632_v11 = vmul.f32 %v628_v34, %v230_v17  ;;  %v652_v7 = vpop.permute.xlu0 %651 }
 0x31c   :  { %v658_v34 = vsel %vm286_vm6, %v652_v7, %v654_v21 }
 0x31d   :  { %v713_v20 = vrot.slane %v632_v11, 4 }
 0x31f   :  { %v741_v51 = vsel %vm391_vm7, %v1491_v53, %v713_v20 }
 0x321   :  { %v650_v4 = vpop.permute.xlu1 %649 }
 0x322   :  { %v660_v58 = vsel %vm286_vm6, %v656_v14, %v650_v4  ;;  %v659_v11 = vsel %vm286_vm6, %v650_v4, %v652_v7  ;;  %v1662_v4 = vld [vmem:[%s1768_s2] sm:$0x3] }
 0x323   :  { %v664_v29 = vmul.f32 %v660_v58, %v294_v48  ;;  %v1615_v14 = vpop.permute.xlu0 %575  ;;  %v590_v48 = vpop.permute.xlu2 %589  ;;  %v661_v21 = vmul.f32 %v659_v11, %v291_v16 }
 0x325   :  { %v725_v38 = vrot.slane %v664_v29, 4  ;;  %v722_v33 = vrot.slane %v661_v21, 4 }
 0x327   :  { %v745_v17 = vsel %vm391_vm7, %v648_v42, %v725_v38 }
 0x328   :  { %v753_v18 = vpack.c.bf16 %v745_v17, %v741_v51 }
 0x329   :  { %v574_v2 = vpop.permute.xlu1 %573 }
 0x32a   :  { %818 = vmatpush.bf16.msrb.mxu3 %v753_v18  ;;  %v578_v53 = vsel %vm126_vm1, %v1596_v43, %v574_v2  ;;  %v577_v38 = vsel %vm126_vm1, %v574_v2, %v1615_v14 }
 0x32b   :  { %v608_v6 = vpop.permute.xlu0 %607  ;;  %v583_v41 = vmul.f32 %v578_v53, %v133_v0  ;;  %v560_v63 = vpop.permute.xlu2 %559 }
 0x32c   :  { %v609_v2 = vsel %vm190_vm2, %v606_v12, %v608_v6  ;;  %v561_v12 = vsel %vm94_vm0, %v558_v8, %v560_v63 }
 0x32d   :  { %v688_v36 = vrot.slane %v583_v41, 4  ;;  %v1784_v41 = vperm.slane %v1216_v60, 1 }
 0x331   :  { %v620_v47 = vpop.permute.xlu1 %619 }
 0x332   :  { %v626_v55 = vsel %vm222_vm5, %v620_v47, %v622_v28  ;;  %v627_v49 = vsel %vm222_vm5, %v618_v39, %v620_v47  ;;  %v1781_v39 = vperm.slane %v1240_v5, 5 }
 0x333   :  { %v629_v28 = vmul.f32 %v627_v49, %v227_v13  ;;  %v570_v13 = vpop.permute.xlu0 %569 }
 0x334   :  { %v630_v58 = vmul.f32 %v626_v55, %v1781_v39  ;;  %v579_v39 = vsel %vm126_vm1, %v570_v13, %v1596_v43 }
 0x335   :  { %v710_v51 = vrot.slane %v629_v28, 4 }
 0x336   :  { %v711_v17 = vrot.slane %v630_v58, 4 }
 0x339   :  { %v1617_v22 = vpop.permute.xlu1 %555 }
 0x33a   :  { %v562_v10 = vsel %vm94_vm0, %v1617_v22, %v558_v8 }
 0x33b   :  { %v567_v15 = vmul.f32 %v562_v10, %v1780_v30  ;;  %v1783_v10 = vperm.slane %v1240_v5, 6  ;;  %v554_v28 = vpop.permute.xlu0 %553 }
 0x33c   :  { %v564_v60 = vsel %vm94_vm0, %v560_v63, %v554_v28 }
 0x33d   :  { %v732_v20 = vsel %vm391_vm7, %v567_v15, %v688_v36 }
 0x341   :  { %v1634_v50 = vpop.permute.xlu1 %587 }
 0x342   :  { %v594_v45 = vsel %vm158_vm4, %v1634_v50, %v590_v48 }
 0x343   :  { %v599_v0 = vmul.f32 %v594_v45, %v165_v9  ;;  %v662_v9 = vmul.f32 %v658_v34, %v1782_v61  ;;  %v602_v45 = vpop.permute.xlu2 %601  ;;  %v568_v34 = vmul.f32 %v561_v12, %v102_v62 }
 0x345   :  { %v736_v29 = vsel %vm391_vm7, %v599_v0, %v700_v3  ;;  %v723_v47 = vrot.slane %v662_v9, 4  ;;  %v616_v3 = vmul.f32 %v609_v2, %v198_v23  ;;  %v611_v0 = vsel %vm190_vm2, %v602_v45, %v1594_v32 }
 0x346   :  { %v748_v42 = vpack.c.bf16 %v736_v29, %v732_v20  ;;  %v612_v23 = vsel %vm190_vm2, %v608_v6, %v602_v45  ;;  %v580_v32 = vsel %vm126_vm1, %v1615_v14, %v570_v13  ;;  %v565_v20 = vmul.f32 %v564_v60, %v99_v54 }
 0x347   :  { %v701_v11 = vrot.slane %v616_v3, 4  ;;  %v613_v58 = vmul.f32 %v612_v23, %v195_v56  ;;  %v581_v14 = vmul.f32 %v580_v32, %v131_v46 }
 0x348   :  { %806 = vmatpush.bf16.msrb.mxu2 %v748_v42 }
 0x349   :  { %v636_v18 = vpop.permute.xlu1 %635  ;;  %v698_v42 = vrot.slane %v613_v58, 4  ;;  %v686_v61 = vrot.slane %v581_v14, 4 }
 0x34a   :  { %v642_v7 = vsel %vm254_vm9, %v636_v18, %v1560_v59  ;;  %v643_v16 = vsel %vm254_vm9, %v634_v24, %v636_v18  ;;  %v584_v59 = vmul.f32 %v577_v38, %v1784_v41  ;;  %v738_v24 = vsel %vm391_vm7, %v1520_v35, %v710_v51 }
 0x34b   :  { %v645_v53 = vmul.f32 %v643_v16, %v259_v25  ;;  %v646_v37 = vmul.f32 %v642_v7, %v1783_v10  ;;  %940 = vmatmul.msk.bf16.vlgmr.msrb.gmra.mxu2 %vm420_vm10, %v1662_v4  ;;  %v739_v25 = vsel %vm391_vm7, %v1505_v1, %v711_v17 }
 0x34c   :  { %v689_v36 = vrot.slane %v584_v59, 4 }
 0x34d   :  { %v742_v30 = vsel %vm391_vm7, %v645_v53, %v722_v33  ;;  %v743_v15 = vsel %vm391_vm7, %v646_v37, %v723_v47 }
 0x34e   :  { %v750_v55 = vpack.c.bf16 %v742_v30, %v738_v24  ;;  %v751_v49 = vpack.c.bf16 %v743_v15, %v739_v25  ;;  %v733_v62 = vsel %vm391_vm7, %v568_v34, %v689_v36 }
 0x350   :  { %779 = vmatpush.bf16.msrb.mxu0 %v750_v55  ;;  %792 = vmatpush.bf16.msrb.mxu1 %v751_v49 }
 0x351   :  { %v592_v35 = vpop.permute.xlu1 %591 }
 0x352   :  { %v593_v1 = vsel %vm158_vm4, %v590_v48, %v592_v35  ;;  %v614_v48 = vmul.f32 %v611_v0, %v196_v44  ;;  %v582_v44 = vmul.f32 %v579_v39, %v132_v27 }
 0x353   :  { %v600_v8 = vmul.f32 %v593_v1, %v166_v52  ;;  %v563_v52 = vsel %vm94_vm0, %v554_v28, %v1617_v22 }
 0x354   :  { %v566_v56 = vmul.f32 %v563_v52, %v100_v40  ;;  %v699_v63 = vrot.slane %v614_v48, 4  ;;  %v687_v9 = vrot.slane %v582_v44, 4  ;;  %v730_v40 = vsel %vm391_vm7, %v565_v20, %v686_v61  ;;  %v851_v48 = vld [vmem:[%s1771_s5] sm:$0xf]  ;;  %s1057_s5 = smov [#allocation7]  }
 0x355   :  { %v737_v6 = vsel %vm391_vm7, %v600_v8, %v701_v11  ;;  %v864_v52 = vld [vmem:[%s1772_s6] sm:$0xf]  ;;  %s921_s6 = sshll.u32 %s1057_s5, 4  ;;  %s922_s6 = int_to_ptr.vmem [resolvable:$true] %s921_s6 }
 0x356   :  { %v749_v43 = vpack.c.bf16 %v737_v6, %v733_v62 }
 0x358   :  { %819 = vmatpush.bf16.msrb.mxu3 %v749_v43 }
 0x359   :  { %v586_v29 = vpop.permute.xlu1 %585 }
 0x35a   :  { %v595_v22 = vsel %vm158_vm4, %v586_v29, %v1634_v50  ;;  %v596_v46 = vsel %vm158_vm4, %v592_v35, %v586_v29  ;;  %v731_v50 = vsel %vm391_vm7, %v566_v56, %v687_v9 }
 0x35b   :  { %v597_v27 = vmul.f32 %v596_v46, %v163_v31  ;;  %v598_v54 = vmul.f32 %v595_v22, %v164_v26  ;;  %941 = vmatmul.msk.bf16.vlgmr.msrb.gmra.mxu3 %vm420_vm10, %v1662_v4  ;;  %v890_v22 = vld.sshfl [vmem:[#allocation1 + $0x10] sm:$0xff pattern:$0x75316420]  ;;  %v891_v46 = vld.sshfl [vmem:[#allocation1 + $0x18] sm:$0xff pattern:$0x75316420] }
 0x35d   :  { %v734_v21 = vsel %vm391_vm7, %v597_v27, %v698_v42  ;;  %v735_v57 = vsel %vm391_vm7, %v598_v54, %v699_v63  ;;  %v888_v63 = vld.sshfl [vmem:[#allocation1] sm:$0xff pattern:$0x75316420]  ;;  %v889_v42 = vld.sshfl [vmem:[#allocation1 + $0x8] sm:$0xff pattern:$0x75316420] }
 0x35e   :  { %v746_v13 = vpack.c.bf16 %v734_v21, %v730_v40  ;;  %v747_v38 = vpack.c.bf16 %v735_v57, %v731_v50 }
 0x360   :  { %780 = vmatpush.bf16.msrb.mxu0 %v746_v13  ;;  %793 = vmatpush.bf16.msrb.mxu1 %v747_v38 }
 0x363   :  { %938 = vmatmul.msk.bf16.vlgmr.msrb.gmra.mxu0 %vm420_vm10, %v1662_v4  ;;  %939 = vmatmul.msk.bf16.vlgmr.msrb.gmra.mxu1 %vm420_vm10, %v1662_v4 }
 0x3ce   :  { %v808_v5 = vpop.f32.mrf.mxu2 }
 0x3cf   :  { %v836_v26 = vmul.f32 %v808_v5, %v808_v5  ;;  %v828_v51 = vsel %vm391_vm7, %v808_v5, 0.0 }
 0x3d1   :  { %v841_v41 = vsel %vm391_vm7, %v836_v26, 0.0 }
 0x3d6   :  { %v810_v19 = vpop.f32.mrf.mxu2 }
 0x3de   :  { %v821_v31 = vpop.f32.mrf.mxu3 }
 0x3df   :  { %v837_v17 = vmul.f32 %v821_v31, %v821_v31  ;;  %v830_v2 = vsel %vm391_vm7, %v821_v31, 0.0 }
 0x3e0   :  { %v782_v18 = vpop.f32.mrf.mxu0  ;;  %v795_v7 = vpop.f32.mrf.mxu1 }
 0x3e1   :  { %v825_v16 = vsel %vm391_vm7, %v782_v18, 0.0  ;;  %v834_v47 = vmul.f32 %v782_v18, %v782_v18  ;;  %v826_v33 = vsel %vm391_vm7, %v795_v7, 0.0  ;;  %v835_v53 = vmul.f32 %v795_v7, %v795_v7 }
 0x3e2   :  { %v827_v10 = vadd.f32 %v826_v33, %v825_v16  ;;  %v843_v30 = vsel %vm391_vm7, %v837_v17, 0.0 }
 0x3e3   :  { %v838_v37 = vsel %vm391_vm7, %v834_v47, 0.0  ;;  %v839_v4 = vsel %vm391_vm7, %v835_v53, 0.0 }
 0x3e4   :  { %v829_v59 = vadd.f32 %v828_v51, %v827_v10  ;;  %v840_v24 = vadd.f32 %v839_v4, %v838_v37 }
 0x3e6   :  { %v823_v25 = vpop.f32.mrf.mxu3  ;;  %v831_v15 = vadd.f32 %v830_v2, %v829_v59  ;;  %v842_v55 = vadd.f32 %v841_v41, %v840_v24 }
 0x3e8   :  { %v797_v49 = vpop.f32.mrf.mxu1  ;;  %832 = vadd.xlane.f32.xlu2 %v831_v15  ;;  %v784_v45 = vpop.f32.mrf.mxu0  ;;  %v844_v3 = vadd.f32 %v843_v30, %v842_v55 }
 0x3ea   :  { %845 = vadd.xlane.f32.xlu0 %v844_v3 }
 0x45b   :  { %v833_v12 = vpop.xlane.xlu2 %832 }
 0x45c   :  { %v847_v36 = vmul.f32 0.001953125, %v833_v12 }
 0x45d   :  { %v846_v35 = vpop.xlane.xlu0 %845 }
 0x45e   :  { %v849_v0 = vmul.f32 %v847_v36, %v847_v36  ;;  %v848_v1 = vmul.f32 0.001953125, %v846_v35 }
 0x460   :  { %v850_v34 = vsub.f32 %v848_v1, %v849_v0 }
 0x462   :  { %v852_v23 = vadd.f32 1e-05, %v850_v34 }
 0x464   :  { %964 = vrsqrt.f32 %v852_v23  ;;  %vm859_vm15 = vweird.f32 %v852_v23 }
 0x46a   :  { %v965_v11 = vpop.eup %964 }
 0x46b   :  { %v854_v28 = vmul.f32 %v965_v11, %v852_v23  ;;  %vm860_vm14 = vweird.f32 %v965_v11 }
 0x46c   :  { %vm861_vm0 = vmor %vm859_vm15, %vm860_vm14 }
 0x46d   :  { %v855_v8 = vmul.f32 %v965_v11, %v854_v28 }
 0x46f   :  { %v856_v39 = vmul.f32 0.5, %v855_v8 }
 0x471   :  { %v857_v32 = vsub.f32 1.5, %v856_v39 }
 0x473   :  { %v858_v62 = vmul.f32 %v965_v11, %v857_v32 }
 0x475   :  { %v862_v6 = vsel %vm861_vm0, %v965_v11, %v858_v62 }
 0x476   :  { %v863_v58 = vmul.f32 %v862_v6, %v851_v48 }
 0x478   :  { %869 = vperm.xlu1 %956, %v863_v58   ;;  %v865_v60 = vmul.f32 %v863_v58, %v847_v36 }
 0x47a   :  { %v866_v43 = vsub.f32 %v864_v52, %v865_v60 }
 0x480   :  { %878 = vperm.xlu1 %956, %v866_v43  }
 0x4ea   :  { %v870_v14 = vpop.permute.xlu1 %869 }
 0x4eb   :  { %v872_v44 = vmul.f32 %v870_v14, %v782_v18  ;;  %v873_v20 = vmul.f32 %v870_v14, %v795_v7  ;;  %v874_v56 = vmul.f32 %v870_v14, %v808_v5  ;;  %v875_v29 = vmul.f32 %v870_v14, %v821_v31 }
 0x4f2   :  { %v879_v61 = vpop.permute.xlu1 %878 }
 0x4f3   :  { %v881_v9 = vadd.f32 %v879_v61, %v872_v44  ;;  %v882_v27 = vadd.f32 %v879_v61, %v873_v20  ;;  %v883_v54 = vadd.f32 %v879_v61, %v874_v56  ;;  %v884_v40 = vadd.f32 %v879_v61, %v875_v29 }
 0x4f5   :  { %v896_v21 = vadd.f32 %v888_v63, %v881_v9  ;;  %v897_v50 = vadd.f32 %v889_v42, %v882_v27  ;;  %v898_v57 = vadd.f32 %v890_v22, %v883_v54  ;;  %v899_v13 = vadd.f32 %v891_v46, %v884_v40 }
 0x4f7   :  { %v901_v38 = vmax.f32 %v897_v50, 0.0  ;;  %v903_v19 = vmax.f32 %v899_v13, 0.0  ;;  %v900_v5 = vmax.f32 %v896_v21, 0.0  ;;  %v902_v31 = vmax.f32 %v898_v57, 0.0 }
 0x4f9   :  { %v908_v26 = vrot.slane %v901_v38, 4  ;;  %v909_v51 = vrot.slane %v903_v19, 4 }
 0x4fb   :  { %v910_v17 = vsel %vm391_vm7, %v900_v5, %v908_v26  ;;  %v911_v18 = vsel %vm391_vm7, %v902_v31, %v909_v51 }
 0x4fc   :  { %914 = vst [vmem:[#allocation7] sm:$0xff] %v910_v17 }
 0x4fd   :  { %915 = vst [vmem:[#allocation7 + $0x8] sm:$0xff] %v911_v18 }
 0x4fe   :  { %926 = dma.vmem_to_hbm [thread:$0]  %s922_s6, 256, %s924_s11, [#allocation4]  }
 0x4ff   :  { %1042 = dma.done.wait [#allocation4], 256  }
 0x500   :  { %1043 = vsyncadd [#allocation4], 4294967040 }
 0x501   :  { %931 = vsyncpa [#allocation3], 1 }
 0x502   :  { %932 = vsyncpa [#allocation6], 1 }
 0x503   :  { %933 = vsyncpa [#allocation4], 1 }

</bundles_post_ra>
